<compile_context>
chip_gen: v5e
topology: v5e:2x2
jax: 0.10.0
libtpu: 0.0.40
codegen_flags: <defaults>
</compile_context>

<pallas_src>
import numpy as np
import jax
import jax.numpy as jnp
from jax.experimental import pallas as pl
from jax.experimental.pallas import tpu as pltpu

_LANES = 128
# Minimum sublane rows per dtype itemsize (f32/i32: 8, bf16: 16, int8/fp8: 32).
_SUBLANE_MIN = {4: 8, 2: 16, 1: 32}
# Per-tile VMEM budget: block * itemsize * 2 pipeline buffers * 2 arrays.
_TILE_BUDGET_BYTES = 8 * 1024 * 1024


def _copy_kernel(x_ref, o_ref):
    # Identity pass-through over one lane-dense (block_rows, width) tile.
    o_ref[...] = x_ref[...]


def _choose_layout(total, dtype):
    """Pick (lane_width, rows, block_rows) for a lane-dense identity copy."""
    itemsize = jnp.dtype(dtype).itemsize
    sub_min = _SUBLANE_MIN.get(itemsize, 8)

    # Widest lane dimension (multiple of 128, capped at 4096) dividing total.
    width = _LANES
    for cand in (4096, 2048, 1024, 512, 256, 128):
        if total % cand == 0:
            width = cand
            break
    rows = total // width

    # Largest row tile whose double-buffered in+out footprint fits the budget.
    per_row_bytes = width * itemsize * 2 * 2
    budget_rows = max(sub_min, _TILE_BUDGET_BYTES // per_row_bytes)

    if rows <= budget_rows:
        # Single full-array block: legal for any shape (block == full array),
        # zero grid-step overhead — the right call for small inputs.
        return width, rows, rows

    cap = min(2048, budget_rows)
    cap -= cap % sub_min
    for cand in range(cap, sub_min - 1, -sub_min):
        if rows % cand == 0:
            return width, rows, cand

    # TODO(synk): rows has no divisor that is a multiple of the sublane
    # minimum; fall back to one full-array block (still correct, just a
    # larger-than-budget tile).
    return width, rows, rows


def _run_passthrough(map_nchw):
    """Demonstration Pallas kernel: lane-dense, tiled identity on `map`."""
    total = map_nchw.size
    if total % _LANES != 0:
        # TODO(synk): pad to a lane multiple for arbitrary shapes; the demo
        # shapes used here are always divisible by 128.
        raise ValueError("input element count must be a multiple of 128")

    width, rows, block_rows = _choose_layout(total, map_nchw.dtype)
    flat = map_nchw.reshape(rows, width)          # lane-dense slab
    num_steps = rows // block_rows
    itemsize = jnp.dtype(map_nchw.dtype).itemsize
    block_bytes = block_rows * width * itemsize

    # Footprint-derived scoped-VMEM budget (in + out, double-buffered) plus
    # slack; capped comfortably under v7x's 64 MiB physical VMEM.
    vmem_limit = min(48 * 1024 * 1024,
                     max(4 * 1024 * 1024, 4 * block_bytes + (1 << 20)))

    # Shard across TensorCores (v7x) only when there are multiple sizable
    # tiles; for a single/tiny tile the parallel axis buys nothing.
    semantics = ("parallel",) if (num_steps >= 2 and block_bytes >= 256 * 1024) \
        else ("arbitrary",)

    out_flat = pl.pallas_call(
        _copy_kernel,
        out_shape=jax.ShapeDtypeStruct(flat.shape, flat.dtype),
        grid=(num_steps,),
        in_specs=[pl.BlockSpec((block_rows, width), lambda i: (i, 0))],
        out_specs=pl.BlockSpec((block_rows, width), lambda i: (i, 0)),
        input_output_aliases={0: 0},     # pure identity: alias input -> output
        compiler_params=pltpu.CompilerParams(
            dimension_semantics=semantics,
            vmem_limit_bytes=vmem_limit,
        ),
        cost_estimate=pl.CostEstimate(
            flops=0,
            transcendentals=0,
            bytes_accessed=2 * total * itemsize,
        ),
    )(flat)
    return out_flat.reshape(map_nchw.shape)


def unet_forward(map_nchw, legend_nchw):
    """Equivalent of UNet.forward(map, legend).

    The reference forward has an empty body and returns None; no pallas_call
    is launched here (any such call would be 100% wasted HBM traffic since
    its result is discarded).
    """
    del map_nchw, legend_nchw
    return None


if __name__ == "__main__":
    key = jax.random.PRNGKey(0)
    k1, k2 = jax.random.split(key)

    # Small shapes consistent with an image-segmentation forward signature.
    n_channels, n_classes = 4, 3  # module ctor args (unused by empty forward)
    map_in = jax.random.normal(k1, (2, n_channels, 16, 16), dtype=jnp.float32)
    legend_in = jax.random.normal(k2, (2, n_channels, 16, 16), dtype=jnp.float32)

    # Snapshot the input to host BEFORE the aliased kernel call so the
    # correctness check remains valid even if a caller donates the buffer.
    map_host = np.asarray(jax.device_get(map_in))

    # Exercise the Pallas kernel once and block on its result.
    kernel_out = _run_passthrough(map_in)
    jax.block_until_ready(kernel_out)

    # Module-equivalent forward: must return None, matching the reference.
    result = unet_forward(map_in, legend_in)
    assert result is None
    assert kernel_out.shape == map_in.shape
    assert np.array_equal(np.asarray(jax.device_get(kernel_out)), map_host)

    print("KERNEL_OK")
</pallas_src>

<mosaic_0001>
module attributes {stable_mosaic.version = 11 : i64} {
  func.func @_copy_kernel(%arg0: i32, %arg1: memref<1x2048xf32, #tpu.memory_space<vmem>>, %arg2: memref<1x2048xf32, #tpu.memory_space<vmem>>) attributes {dimension_semantics = [#tpu.dimension_semantics<arbitrary>], iteration_bounds = array<i64: 1>, scalar_prefetch = 0 : i64, scratch_operands = 0 : i64, tpu.core_type = #tpu.core_type<tc>, window_params = [{transform_indices = @transform_0, window_bounds = array<i64: 1, 2048>}, {transform_indices = @transform_1, window_bounds = array<i64: 1, 2048>}]} {
    %c0 = arith.constant 0 : index
    %c0_0 = arith.constant 0 : index
    %0 = vector.load %arg1[%c0, %c0_0] : memref<1x2048xf32, #tpu.memory_space<vmem>>, vector<1x2048xf32>
    %c0_1 = arith.constant 0 : index
    %c0_2 = arith.constant 0 : index
    %1 = vector.load %arg2[%c0_1, %c0_2] : memref<1x2048xf32, #tpu.memory_space<vmem>>, vector<1x2048xf32>
    tpu.vector_store %arg2[%c0_1, %c0_2], %0 {strides = array<i32>} : memref<1x2048xf32, #tpu.memory_space<vmem>>, vector<1x2048xf32>,
    return
  }
  func.func @transform_0(%arg0: i32) -> (i32, i32) {
    %c0_i32 = arith.constant 0 : i32
    %c0_i32_0 = arith.constant 0 : i32
    return %arg0, %c0_i32 : i32, i32
  }
  func.func @transform_1(%arg0: i32) -> (i32, i32) {
    %c0_i32 = arith.constant 0 : i32
    %c0_i32_0 = arith.constant 0 : i32
    return %arg0, %c0_i32 : i32, i32
  }
}

</mosaic_0001>

<bundles_post_ra>
// kernel: tpu_custom_call.1
= control target key start
LH: loop header
LB: loop body
LE: loop exit
PB: predicated region body
PF: predicated region fallthrough
CT: control target
= control target key end

     0   :  { %6 = vsyncpa [#allocation3], 0  ;;  %s116_s0 = inlined_call_operand.hbm [shape: f32[1,2048], index: 0, kind: input, shape index: {}, may-alias: {0,1}]   ;;  %s117_s1 = inlined_call_operand.hbm [shape: f32[1,2048], index: 1, kind: output, shape index: {}, may-alias: {0,1}]  }
   0x1   :  { %7 = vsyncpa [#allocation4], 0  ;;  %s13_s8 = sshll.u32 %s116_s0, 4  ;;  %s98_s9 = smov [#allocation2]   ;;  %s14_s8 = int_to_ptr.hbm [resolvable:$true] %s13_s8 }
   0x2   :  { %s15_s10 = sshll.u32 %s98_s9, 4  ;;  %s16_s10 = int_to_ptr.vmem [resolvable:$true] %s15_s10 }
   0x3   :  { %18 = dma.hbm_to_vmem [thread:$0]  %s14_s8, 256, %s16_s10, [#allocation3]  }
   0x4   :  { %94 = dma.done.wait [#allocation3], 256  }
   0x5   :  { %95 = vsyncadd [#allocation3], 4294967040  ;;  %s99_s11 = smov [#allocation5]   ;;  %s34_s15 = sshll.u32 %s117_s1, 4  ;;  %v23_v0 = vld [vmem:[#allocation2] sm:$0xff]  ;;  %v24_v1 = vld [vmem:[#allocation2 + $0x8] sm:$0xff]  ;;  %s35_s15 = int_to_ptr.hbm [resolvable:$true] %s34_s15 }
   0x6   :  { %s32_s12 = sshll.u32 %s99_s11, 4  ;;  %25 = vst [vmem:[#allocation5] sm:$0xff] %v23_v0  ;;  %s33_s12 = int_to_ptr.vmem [resolvable:$true] %s32_s12 }
   0x7   :  { %26 = vst [vmem:[#allocation5 + $0x8] sm:$0xff] %v24_v1 }
   0x8   :  { %37 = dma.vmem_to_hbm [thread:$0]  %s33_s12, 256, %s35_s15, [#allocation4]  }
   0x9   :  { %96 = dma.done.wait [#allocation4], 256  }
   0xa   :  { %97 = vsyncadd [#allocation4], 4294967040 }
   0xb   :  { %42 = vsyncpa [#allocation3], 1 }
   0xc   :  { %43 = vsyncpa [#allocation4], 1 }

</bundles_post_ra>
